<compile_context>
chip_gen: v7x
topology: tpu7x:2x2x1
jax: 0.10.0
libtpu: 0.0.40
codegen_flags: <defaults>
</compile_context>

<pallas_src>
import math

import jax
import jax.numpy as jnp
from jax import lax
from jax.experimental import pallas as pl
from jax.experimental.pallas import tpu as pltpu


# --------------------------------------------------------------------------
# Path A: small source, VMEM-resident gather (no DMA descriptors per row).
# --------------------------------------------------------------------------
def _selector_vmem_gather_kernel(idx_ref, x_ref, o_ref):
    """idx_ref: SMEM (M_pad,) i32 | x_ref: VMEM (N, D) resident | o_ref: VMEM (tm, D)."""
    tm = o_ref.shape[0]
    base = pl.multiple_of(pl.program_id(0) * tm, tm)

    def _copy(j, c):
        row = idx_ref[base + j]
        o_ref[pl.ds(j, 1), :] = x_ref[pl.ds(row, 1), :]
        return c

    lax.fori_loop(0, tm, _copy, 0, unroll=min(8, tm))


# --------------------------------------------------------------------------
# Path B: large source, HBM-resident, per-row DMA gather with aggregated wait.
# --------------------------------------------------------------------------
def _selector_dma_gather_kernel(idx_ref, x_hbm, o_ref, copy_sem):
    """idx_ref: SMEM (M_pad,) i32 | x_hbm: ANY/HBM (N, D) | o_ref: VMEM (tm, D).

    Issues tm row DMAs (all the same size, sharing copy_sem), then retires them
    with a single aggregated wait whose descriptor covers tm*D elements — DMA
    semaphores count bytes, so one wait of tile-size bytes drains all tm copies.
    Padded tail slots gather row 0 (sliced off by the wrapper); only the last
    tile can carry that tiny waste.
    """
    tm = o_ref.shape[0]
    base = pl.multiple_of(pl.program_id(0) * tm, tm)

    def _start(j, c):
        row = idx_ref[base + j]
        pltpu.make_async_copy(x_hbm.at[row], o_ref.at[j], copy_sem).start()
        return c

    lax.fori_loop(0, tm, _start, 0, unroll=min(16, tm))

    # Aggregated drain: descriptor shape only determines the byte count the
    # wait consumes from copy_sem (tm * D * itemsize == sum of all row copies).
    pltpu.make_async_copy(o_ref, o_ref, copy_sem).wait()


# --------------------------------------------------------------------------
# Wrapper / dispatch
# --------------------------------------------------------------------------
def _round_up(a: int, b: int) -> int:
    return ((a + b - 1) // b) * b


def _vmem_capacity_bytes() -> int:
    try:
        return int(pltpu.get_tpu_info().vmem_capacity_bytes)
    except Exception:
        return 128 * 1024 * 1024  # v5e/v6e physical VMEM


def selector_forward(
    x: jax.Array,
    idx: jax.Array,
    *,
    tm: int | None = None,
    force_path: str | None = None,   # None | "vmem" | "dma"  (testing hook)
) -> jax.Array:
    """Pallas implementation of `Selector.forward`: returns x[idx] (gather on axis 0)."""
    N = x.shape[0]
    feat_shape = x.shape[1:]
    M = int(idx.shape[0])

    if M == 0:
        return jnp.zeros((0,) + feat_shape, dtype=x.dtype)
    if N == 0:
        raise ValueError("Selector: cannot gather from an empty source tensor")

    D = int(math.prod(feat_shape)) if feat_shape else 1
    if D == 0:
        # Degenerate zero-size feature dims: nothing to move.
        return jnp.zeros((M,) + feat_shape, dtype=x.dtype)

    x2 = x.reshape(N, D)  # contiguous collapse of trailing dims (no padding copy)

    # PyTorch-style negative indices wrap; clamp as an OOB guard (Pallas DMA /
    # dynamic slices have no graceful out-of-range behaviour).  easier
    # validates 0 <= idx at compile() time, so the clamp is a no-op for valid
    # modules (documented silent deviation for invalid indices).
    idx32 = idx.astype(jnp.int32)
    idx32 = jnp.where(idx32 < 0, idx32 + N, idx32)
    idx32 = jnp.clip(idx32, 0, N - 1)

    itemsize = jnp.dtype(x.dtype).itemsize

    # Generation-aware VMEM budgets (v5e/v6e: 128 MiB physical, v7x: 64 MiB).
    vmem_cap = _vmem_capacity_bytes()
    out_tile_budget = max(vmem_cap // 8, 2 * 1024 * 1024)   # double-buffered out tile
    src_budget = vmem_cap // 8                               # resident source (x2 buffers)
    vmem_limit = int(min(vmem_cap // 2, 64 * 1024 * 1024))

    use_vmem_path = (2 * N * D * itemsize) <= src_budget
    if force_path == "vmem":
        use_vmem_path = True
    elif force_path == "dma":
        use_vmem_path = False

    # Row-tile size: as large as the VMEM budget allows (amortizes the ~0.35us
    # per-grid-step overhead and keeps many DMAs in flight on the DMA path).
    if tm is None:
        tm = 2048
        while tm > 8 and 2 * tm * D * itemsize > out_tile_budget:
            tm //= 2
    tm = min(tm, _round_up(M, 8))
    tm = max(8, _round_up(tm, 8))          # sublane-aligned row count
    M_pad = _round_up(M, tm)
    # Padded tail indices gather row 0; those rows are sliced off below.
    idx_pad = jnp.pad(idx32, (0, M_pad - M))

    compiler_params = pltpu.CompilerParams(
        dimension_semantics=("parallel",),   # independent output tiles
        vmem_limit_bytes=vmem_limit,
    )

    if use_vmem_path:
        out = pl.pallas_call(
            _selector_vmem_gather_kernel,
            out_shape=jax.ShapeDtypeStruct((M_pad, D), x.dtype),
            grid_spec=pltpu.PrefetchScalarGridSpec(
                num_scalar_prefetch=1,               # idx lands in SMEM pre-grid
                grid=(M_pad // tm,),
                # Full-array block + constant index_map: source is brought to
                # VMEM once and stays resident across all grid steps.
                in_specs=[pl.BlockSpec((N, D), lambda i, idx_r: (0, 0))],
                out_specs=pl.BlockSpec((tm, D), lambda i, idx_r: (i, 0)),
            ),
            compiler_params=compiler_params,
        )(idx_pad, x2)
    else:
        out = pl.pallas_call(
            _selector_dma_gather_kernel,
            out_shape=jax.ShapeDtypeStruct((M_pad, D), x.dtype),
            grid_spec=pltpu.PrefetchScalarGridSpec(
                num_scalar_prefetch=1,               # idx lands in SMEM pre-grid
                grid=(M_pad // tm,),
                in_specs=[
                    pl.BlockSpec(memory_space=pl.ANY),   # source stays in HBM
                ],
                # Block last dim == full array dim, so D needs no 128 padding.
                out_specs=pl.BlockSpec((tm, D), lambda i, idx_r: (i, 0)),
                scratch_shapes=[pltpu.SemaphoreType.DMA(())],
            ),
            compiler_params=compiler_params,
        )(idx_pad, x2)

    out = out[:M]
    return out.reshape((M,) + feat_shape)


if __name__ == "__main__":
    key = jax.random.PRNGKey(0)
    k_x, k_idx = jax.random.split(key)

    # Source tensor: N=16 rows, feature shape (4, 32) -> flattens to D=128 lanes.
    N, F0, F1 = 16, 4, 32
    x = jax.random.normal(k_x, (N, F0, F1), dtype=jnp.float32)

    # Selector index: M=8 gather indices in [0, N). (In easier these come from a
    # DataLoader; here they are built deterministically in-script.)
    M = 8
    idx = jax.random.randint(k_idx, (M,), 0, N, dtype=jnp.int32)

    # Auto-dispatch: small source -> VMEM-resident fast path.
    out = jax.block_until_ready(selector_forward(x, idx))
    ref = x[idx]  # PyTorch `tensor[self.idx]` semantics
    assert out.shape == (M, F0, F1), out.shape
    assert out.dtype == x.dtype
    assert jnp.array_equal(out, ref), "Pallas gather mismatch vs reference (vmem path)"

    # Ragged M (tail tile), small explicit tile -> multi-step grid, plus one
    # negative index (PyTorch wrap semantics).
    M2 = 20
    idx2 = jax.random.randint(k_idx, (M2,), 0, N, dtype=jnp.int32)
    idx2 = idx2.at[3].set(-1)  # wraps to N-1, like torch
    out2 = jax.block_until_ready(selector_forward(x, idx2, tm=8))
    ref2 = x[idx2]
    assert out2.shape == (M2, F0, F1), out2.shape
    assert jnp.array_equal(out2, ref2), "Pallas gather mismatch vs reference (tail/negative)"

    # Force the HBM DMA-gather path (the one used for VMEM-exceeding sources)
    # at small shape to verify it end-to-end, incl. the aggregated wait.
    out3 = jax.block_until_ready(selector_forward(x, idx2, tm=8, force_path="dma"))
    assert jnp.array_equal(out3, ref2), "Pallas gather mismatch vs reference (dma path)"

    print("KERNEL_OK")
</pallas_src>

<mosaic_0001>
module attributes {stable_mosaic.version = 11 : i64} {
  func.func @_selector_vmem_gather_kernel(%arg0: i32, %arg1: memref<8xi32, #tpu.memory_space<smem>>, %arg2: memref<16x128xf32, #tpu.memory_space<vmem>>, %arg3: memref<8x128xf32, #tpu.memory_space<vmem>>) attributes {dimension_semantics = [#tpu.dimension_semantics<parallel>], iteration_bounds = array<i64: 1>, scalar_prefetch = 1 : i64, scratch_operands = 0 : i64, tpu.core_type = #tpu.core_type<tc>, window_params = [{pipeline_mode = #tpu.pipeline_mode<synchronous>, transform_indices = @transform_0, window_bounds = array<i64: 16, 128>}, {transform_indices = @transform_1, window_bounds = array<i64: 8, 128>}]} {
    %c8_i32 = arith.constant 8 : i32
    %0 = arith.muli %arg0, %c8_i32 : i32
    %1 = tpu.assume_multiple %0, 8 : i32
    %c0_i32 = arith.constant 0 : i32
    %2 = arith.addi %1, %c0_i32 : i32
    %3 = arith.index_cast %2 : i32 to index
    %4 = memref.load %arg1[%3] : memref<8xi32, #tpu.memory_space<smem>>
    %5 = arith.index_cast %4 : i32 to index
    %c0 = arith.constant 0 : index
    %6 = vector.load %arg2[%5, %c0] : memref<16x128xf32, #tpu.memory_space<vmem>>, vector<1x128xf32>
    %7 = arith.index_cast %c0_i32 : i32 to index
    %c0_0 = arith.constant 0 : index
    %8 = vector.load %arg3[%7, %c0_0] : memref<8x128xf32, #tpu.memory_space<vmem>>, vector<1x128xf32>
    tpu.vector_store %arg3[%7, %c0_0], %6 {strides = array<i32>} : memref<8x128xf32, #tpu.memory_space<vmem>>, vector<1x128xf32>,
    %c1_i32 = arith.constant 1 : i32
    %9 = arith.addi %1, %c1_i32 : i32
    %10 = arith.index_cast %9 : i32 to index
    %11 = memref.load %arg1[%10] : memref<8xi32, #tpu.memory_space<smem>>
    %12 = arith.index_cast %11 : i32 to index
    %c0_1 = arith.constant 0 : index
    %13 = vector.load %arg2[%12, %c0_1] : memref<16x128xf32, #tpu.memory_space<vmem>>, vector<1x128xf32>
    %14 = arith.index_cast %c1_i32 : i32 to index
    %c0_2 = arith.constant 0 : index
    %15 = vector.load %arg3[%14, %c0_2] : memref<8x128xf32, #tpu.memory_space<vmem>>, vector<1x128xf32>
    tpu.vector_store %arg3[%14, %c0_2], %13 {strides = array<i32>} : memref<8x128xf32, #tpu.memory_space<vmem>>, vector<1x128xf32>,
    %c2_i32 = arith.constant 2 : i32
    %16 = arith.addi %1, %c2_i32 : i32
    %17 = arith.index_cast %16 : i32 to index
    %18 = memref.load %arg1[%17] : memref<8xi32, #tpu.memory_space<smem>>
    %19 = arith.index_cast %18 : i32 to index
    %c0_3 = arith.constant 0 : index
    %20 = vector.load %arg2[%19, %c0_3] : memref<16x128xf32, #tpu.memory_space<vmem>>, vector<1x128xf32>
    %21 = arith.index_cast %c2_i32 : i32 to index
    %c0_4 = arith.constant 0 : index
    %22 = vector.load %arg3[%21, %c0_4] : memref<8x128xf32, #tpu.memory_space<vmem>>, vector<1x128xf32>
    tpu.vector_store %arg3[%21, %c0_4], %20 {strides = array<i32>} : memref<8x128xf32, #tpu.memory_space<vmem>>, vector<1x128xf32>,
    %c3_i32 = arith.constant 3 : i32
    %23 = arith.addi %1, %c3_i32 : i32
    %24 = arith.index_cast %23 : i32 to index
    %25 = memref.load %arg1[%24] : memref<8xi32, #tpu.memory_space<smem>>
    %26 = arith.index_cast %25 : i32 to index
    %c0_5 = arith.constant 0 : index
    %27 = vector.load %arg2[%26, %c0_5] : memref<16x128xf32, #tpu.memory_space<vmem>>, vector<1x128xf32>
    %28 = arith.index_cast %c3_i32 : i32 to index
    %c0_6 = arith.constant 0 : index
    %29 = vector.load %arg3[%28, %c0_6] : memref<8x128xf32, #tpu.memory_space<vmem>>, vector<1x128xf32>
    tpu.vector_store %arg3[%28, %c0_6], %27 {strides = array<i32>} : memref<8x128xf32, #tpu.memory_space<vmem>>, vector<1x128xf32>,
    %c4_i32 = arith.constant 4 : i32
    %30 = arith.addi %1, %c4_i32 : i32
    %31 = arith.index_cast %30 : i32 to index
    %32 = memref.load %arg1[%31] : memref<8xi32, #tpu.memory_space<smem>>
    %33 = arith.index_cast %32 : i32 to index
    %c0_7 = arith.constant 0 : index
    %34 = vector.load %arg2[%33, %c0_7] : memref<16x128xf32, #tpu.memory_space<vmem>>, vector<1x128xf32>
    %35 = arith.index_cast %c4_i32 : i32 to index
    %c0_8 = arith.constant 0 : index
    %36 = vector.load %arg3[%35, %c0_8] : memref<8x128xf32, #tpu.memory_space<vmem>>, vector<1x128xf32>
    tpu.vector_store %arg3[%35, %c0_8], %34 {strides = array<i32>} : memref<8x128xf32, #tpu.memory_space<vmem>>, vector<1x128xf32>,
    %c5_i32 = arith.constant 5 : i32
    %37 = arith.addi %1, %c5_i32 : i32
    %38 = arith.index_cast %37 : i32 to index
    %39 = memref.load %arg1[%38] : memref<8xi32, #tpu.memory_space<smem>>
    %40 = arith.index_cast %39 : i32 to index
    %c0_9 = arith.constant 0 : index
    %41 = vector.load %arg2[%40, %c0_9] : memref<16x128xf32, #tpu.memory_space<vmem>>, vector<1x128xf32>
    %42 = arith.index_cast %c5_i32 : i32 to index
    %c0_10 = arith.constant 0 : index
    %43 = vector.load %arg3[%42, %c0_10] : memref<8x128xf32, #tpu.memory_space<vmem>>, vector<1x128xf32>
    tpu.vector_store %arg3[%42, %c0_10], %41 {strides = array<i32>} : memref<8x128xf32, #tpu.memory_space<vmem>>, vector<1x128xf32>,
    %c6_i32 = arith.constant 6 : i32
    %44 = arith.addi %1, %c6_i32 : i32
    %45 = arith.index_cast %44 : i32 to index
    %46 = memref.load %arg1[%45] : memref<8xi32, #tpu.memory_space<smem>>
    %47 = arith.index_cast %46 : i32 to index
    %c0_11 = arith.constant 0 : index
    %48 = vector.load %arg2[%47, %c0_11] : memref<16x128xf32, #tpu.memory_space<vmem>>, vector<1x128xf32>
    %49 = arith.index_cast %c6_i32 : i32 to index
    %c0_12 = arith.constant 0 : index
    %50 = vector.load %arg3[%49, %c0_12] : memref<8x128xf32, #tpu.memory_space<vmem>>, vector<1x128xf32>
    tpu.vector_store %arg3[%49, %c0_12], %48 {strides = array<i32>} : memref<8x128xf32, #tpu.memory_space<vmem>>, vector<1x128xf32>,
    %c7_i32 = arith.constant 7 : i32
    %51 = arith.addi %1, %c7_i32 : i32
    %52 = arith.index_cast %51 : i32 to index
    %53 = memref.load %arg1[%52] : memref<8xi32, #tpu.memory_space<smem>>
    %54 = arith.index_cast %53 : i32 to index
    %c0_13 = arith.constant 0 : index
    %55 = vector.load %arg2[%54, %c0_13] : memref<16x128xf32, #tpu.memory_space<vmem>>, vector<1x128xf32>
    %56 = arith.index_cast %c7_i32 : i32 to index
    %c0_14 = arith.constant 0 : index
    %57 = vector.load %arg3[%56, %c0_14] : memref<8x128xf32, #tpu.memory_space<vmem>>, vector<1x128xf32>
    tpu.vector_store %arg3[%56, %c0_14], %55 {strides = array<i32>} : memref<8x128xf32, #tpu.memory_space<vmem>>, vector<1x128xf32>,
    %c8_i32_15 = arith.constant 8 : i32
    return
  }
  func.func @transform_0(%arg0: i32, %arg1: memref<8xi32, #tpu.memory_space<smem>>) -> (i32, i32) {
    %c0_i32 = arith.constant 0 : i32
    %c0_i32_0 = arith.constant 0 : i32
    %c0_i32_1 = arith.constant 0 : i32
    return %c0_i32, %c0_i32_0 : i32, i32
  }
  func.func @transform_1(%arg0: i32, %arg1: memref<8xi32, #tpu.memory_space<smem>>) -> (i32, i32) {
    %c0_i32 = arith.constant 0 : i32
    %c0_i32_0 = arith.constant 0 : i32
    return %arg0, %c0_i32 : i32, i32
  }
}

</mosaic_0001>

<bundles_post_ra>
// kernel: tpu_custom_call.1
= control target key start
LH: loop header
LB: loop body
LE: loop exit
PB: predicated region body
PF: predicated region fallthrough
CT: control target
= control target key end

     0   :  { %s226_s0 = inlined_call_operand.hbm [shape: s32[8], index: 0, kind: input, shape index: {}]   ;;  %s227_s1 = inlined_call_operand.hbm [shape: f32[16,128], index: 1, kind: input, shape index: {}]   ;;  %s228_s2 = inlined_call_operand.hbm [shape: f32[8,128], index: 2, kind: output, shape index: {}]  }
   0x1   :  { %s103_s11 = scalar_lea.hbm %s226_s0, 16 }
   0x2   :  { %p104_p0 = scmp.ne.s32.totalorder %s226_s0, %s103_s11  ;;  %p107_p1 = scmp.lt.u32.totalorder %s103_s11, %s226_s0 }
   0x4   :  { %p109_p2 = pnand %p107_p1, %p104_p0 }
   0x6   :  { %112 = shalt.err (!%p109_p2)  }
   0x7   :  { %s163_s16 = smov [#allocation3]  }
   0x8   :  { %8 = dma.hbm_to_smem %s226_s0, 16, %s163_s16, [#allocation2] }
   0x9   :  { %157 = dma.done.wait [#allocation2], 16 }
   0xa   :  { %158 = vsyncadd [#allocation2], 4294967280 }
   0xb   :  { %10 = sfence }
   0xc   :  { %11 = vsyncpa [#allocation5], 0 }
   0xd   :  { %12 = vsyncpa [#allocation6], 0  ;;  %s164_s19 = smov [#allocation4]   ;;  %s113_s23 = scalar_lea.hbm %s227_s1, 256 }
   0xe   :  { %s18_s20 = sshll.u32 %s164_s19, 4  ;;  %p114_p3 = scmp.ne.s32.totalorder %s227_s1, %s113_s23  ;;  %s19_s20 = int_to_ptr.vmem [resolvable:$true] %s18_s20 }
   0xf   :  { %p117_p4 = scmp.lt.u32.totalorder %s113_s23, %s227_s1 }
  0x11   :  { %p119_p5 = pnand %p117_p4, %p114_p3 }
  0x13   :  { %122 = shalt.err (!%p119_p5)
}
  0x14   :  { %s123_s0 = scalar_lea.vmem %s19_s20, 256  ;;  %p128_p7 = scmp.lt.s32.totalorder %s19_s20, %s19_s20 }
  0x15   :  { %p124_p6 = scmp.ne.s32.totalorder %s19_s20, %s123_s0  ;;  %p129_p8 = scmp.lt.s32.totalorder %s123_s0, %s123_s0 }
  0x17   :  { %p130_p9 = por %p129_p8, %p128_p7 }
  0x19   :  { %p131_p10 = pnand %p130_p9, %p124_p6 }
  0x1b   :  { %134 = shalt.err (!%p131_p10)
}
  0x1c   :  { %s165_s28 = smov 128   ;;  %s166_s29 = smov 8  }
  0x1d   :  { %24 = dma.hbm_to_vmem [thread:$0]  %s227_s1, 256, %s19_s20, [#allocation5], %s165_s28, %s165_s28, %s166_s29  }
  0x1e   :  { %159 = dma.done.wait [#allocation5], 256  }
  0x1f   :  { %160 = vsyncadd [#allocation5], 4294967040  ;;  %s29_s4 = sld [smem:[#allocation3]]  ;;  %s91_s5 = sld [smem:[#allocation3 + $0x1]] }
  0x20   :  { %s92_s6 = sld [smem:[#allocation3 + $0x2]]  ;;  %s93_s7 = sld [smem:[#allocation3 + $0x3]] }
  0x21   :  { %s94_s8 = sld [smem:[#allocation3 + $0x4]]  ;;  %s95_s9 = sld [smem:[#allocation3 + $0x5]] }
  0x22   :  { %s96_s10 = sld [smem:[#allocation3 + $0x6]]  ;;  %s97_s11 = sld [smem:[#allocation3 + $0x7]] }
  0x23   :  { %s167_s12 = smov [#allocation7]  }
  0x24   :  { %s74_s13 = sshll.u32 %s167_s12, 4  ;;  %s207_s13 = int_to_ptr.vmem [resolvable:$true] %s74_s13 }
  0x25   :  { %s30_s14 = scalar_lea.vmem [#allocation4], %s29_s4  ;;  %s35_s15 = scalar_lea.vmem [#allocation4], %s91_s5 }
  0x26   :  { %v31_v0 = vld [vmem:[%s30_s14] sm:$0x1]  ;;  %s40_s1 = scalar_lea.vmem [#allocation4], %s92_s6  ;;  %s45_s16 = scalar_lea.vmem [#allocation4], %s93_s7 }
  0x27   :  { %v36_v1 = vld [vmem:[%s35_s15] sm:$0x1]  ;;  %32 = vst [vmem:[#allocation7] sm:$0x1] %v31_v0  ;;  %s50_s17 = scalar_lea.vmem [#allocation4], %s94_s8  ;;  %s55_s18 = scalar_lea.vmem [#allocation4], %s95_s9 }
  0x28   :  { %37 = vst [vmem:[#allocation7 + $0x1] sm:$0x1] %v36_v1  ;;  %v41_v2 = vld [vmem:[%s40_s1] sm:$0x1]  ;;  %s60_s19 = scalar_lea.vmem [#allocation4], %s96_s10  ;;  %s65_s20 = scalar_lea.vmem [#allocation4], %s97_s11 }
  0x29   :  { %v46_v3 = vld [vmem:[%s45_s16] sm:$0x1]  ;;  %42 = vst [vmem:[#allocation7 + $0x2] sm:$0x1] %v41_v2  ;;  %s135_s21 = scalar_lea.vmem %s207_s13, 128  ;;  %p140_p12 = scmp.lt.s32.totalorder %s207_s13, %s207_s13 }
  0x2a   :  { %47 = vst [vmem:[#allocation7 + $0x3] sm:$0x1] %v46_v3  ;;  %v51_v4 = vld [vmem:[%s50_s17] sm:$0x1]  ;;  %p136_p11 = scmp.ne.s32.totalorder %s207_s13, %s135_s21  ;;  %p141_p13 = scmp.lt.s32.totalorder %s135_s21, %s135_s21 }
  0x2b   :  { %v56_v5 = vld [vmem:[%s55_s18] sm:$0x1]  ;;  %52 = vst [vmem:[#allocation7 + $0x4] sm:$0x1] %v51_v4 }
  0x2c   :  { %57 = vst [vmem:[#allocation7 + $0x5] sm:$0x1] %v56_v5  ;;  %v61_v6 = vld [vmem:[%s60_s19] sm:$0x1]  ;;  %p142_p0 = por %p141_p13, %p140_p12 }
  0x2d   :  { %v66_v7 = vld [vmem:[%s65_s20] sm:$0x1]  ;;  %62 = vst [vmem:[#allocation7 + $0x6] sm:$0x1] %v61_v6 }
  0x2e   :  { %67 = vst [vmem:[#allocation7 + $0x7] sm:$0x1] %v66_v7  ;;  %p143_p1 = pnand %p142_p0, %p136_p11 }
  0x30   :  { %146 = shalt.err (!%p143_p1)
}
  0x31   :  { %s147_s24 = scalar_lea.hbm %s228_s2, 128 }
  0x32   :  { %p148_p2 = scmp.ne.s32.totalorder %s228_s2, %s147_s24  ;;  %p151_p3 = scmp.lt.u32.totalorder %s147_s24, %s228_s2 }
  0x34   :  { %p153_p4 = pnand %p151_p3, %p148_p2 }
  0x36   :  { %156 = shalt.err (!%p153_p4)
}
  0x37   :  { %77 = dma.vmem_to_hbm [thread:$0]  %s207_s13, 128, %s228_s2, [#allocation6]  }
  0x38   :  { %161 = dma.done.wait [#allocation6], 128  }
  0x39   :  { %162 = vsyncadd [#allocation6], 4294967168 }
  0x3a   :  { %81 = vsyncpa [#allocation5], 1 }
  0x3b   :  { %82 = vsyncpa [#allocation6], 1 }

</bundles_post_ra>
